<compile_context>
chip_gen: v7x
topology: tpu7x:2x2x1
jax: 0.10.0
libtpu: 0.0.40
codegen_flags: <defaults>
</compile_context>

<pallas_src>
import functools
import math

import jax
import jax.numpy as jnp
from jax.experimental import pallas as pl
from jax.experimental.pallas import tpu as pltpu


def _round_up(x, m):
    return (x + m - 1) // m * m


# ---------------------------------------------------------------------------
# 1x1 conv (+bias, +ReLU) as a row-tiled pixel matmul
# ---------------------------------------------------------------------------

def _mm_bias_relu_kernel(x_ref, w_ref, b_ref, o_ref):
    y = jnp.dot(x_ref[...], w_ref[...], preferred_element_type=jnp.float32)
    o_ref[...] = jnp.maximum(y + b_ref[...], 0.0).astype(o_ref.dtype)


def conv1x1_relu(x2d, w, b, *, tile_rows=1024):
    """x2d: (M, Cin) flattened pixels; w: (Cin, Cout); b: (1, Cout).  Returns bf16.

    Tiled over pixel rows so the pipeline is double-buffered and the grid can be
    sharded across TensorCores.  `tile_rows` is the per-generation knob: keep
    2 * (in_tile + out_tile) + weights well under the scoped VMEM limit
    (16 MiB v5e / 32 MiB v6e,v7x default; v7x total VMEM is only 64 MiB).
    """
    x2d = x2d.astype(jnp.bfloat16)
    M, K = x2d.shape
    N = w.shape[1]
    tm = min(tile_rows, _round_up(M, 16))       # multiple of 16 (bf16 sublane pack)
    m_pad = _round_up(M, tm)
    if m_pad != M:
        x2d = jnp.pad(x2d, ((0, m_pad - M), (0, 0)))
    out = pl.pallas_call(
        _mm_bias_relu_kernel,
        out_shape=jax.ShapeDtypeStruct((m_pad, N), jnp.bfloat16),
        grid=(m_pad // tm,),
        in_specs=[pl.BlockSpec((tm, K), lambda i: (i, 0)),
                  pl.BlockSpec((K, N), lambda i: (0, 0)),
                  pl.BlockSpec((1, N), lambda i: (0, 0))],
        out_specs=pl.BlockSpec((tm, N), lambda i: (i, 0)),
        compiler_params=pltpu.CompilerParams(dimension_semantics=("parallel",)),
    )(x2d, w.astype(jnp.bfloat16), b)
    return out[:M] if m_pad != M else out


# ---------------------------------------------------------------------------
# SelfAttentionBlock: G attention groups per grid step
# ---------------------------------------------------------------------------

def _attn_kernel(x_ref, wqkv_ref, bqkv_ref, wq2_ref, bq2_ref, wk2_ref, bk2_ref,
                 wo_ref, bo_ref, o_ref, *, isa_c, scale):
    G, L, C = x_ref.shape
    xf = x_ref[...].reshape(G * L, C)                              # bf16 (G*L, C)

    # Fused q1 | k1 | v projection: one (G*L, C) @ (C, 2*isa_c + C) MXU matmul.
    y = jnp.dot(xf, wqkv_ref[...], preferred_element_type=jnp.float32)
    y = y + bqkv_ref[...]
    q = jnp.maximum(y[:, :isa_c], 0.0)                             # ReLU (conv+act)
    k = jnp.maximum(y[:, isa_c:2 * isa_c], 0.0)
    v = y[:, 2 * isa_c:]                                           # plain conv

    # Second q/k projection stage (key_query_num_convs=2), shared across groups.
    q = jnp.maximum(jnp.dot(q.astype(jnp.bfloat16), wq2_ref[...],
                            preferred_element_type=jnp.float32) + bq2_ref[...], 0.0)
    k = jnp.maximum(jnp.dot(k.astype(jnp.bfloat16), wk2_ref[...],
                            preferred_element_type=jnp.float32) + bk2_ref[...], 0.0)

    qg = q.astype(jnp.bfloat16).reshape(G, L, isa_c)
    kg = k.astype(jnp.bfloat16).reshape(G, L, isa_c)
    vg = v.astype(jnp.bfloat16).reshape(G, L, C)

    # Per-group scaled dot-product attention (softmax over keys).
    sim = jnp.einsum('gld,gmd->glm', qg, kg,
                     preferred_element_type=jnp.float32) * scale
    sim = sim - jnp.max(sim, axis=-1, keepdims=True)
    p = jnp.exp(sim)
    inv = pl.reciprocal(jnp.sum(p, axis=-1, keepdims=True), approx=True)
    attn = (p * inv).astype(jnp.bfloat16)
    ctx = jnp.einsum('glm,gmc->glc', attn, vg,
                     preferred_element_type=jnp.float32)           # (G, L, C) f32

    # output_project: 1x1 conv + bias + ReLU, shared across groups.
    out = jnp.dot(ctx.reshape(G * L, C).astype(jnp.bfloat16), wo_ref[...],
                  preferred_element_type=jnp.float32) + bo_ref[...]
    o_ref[...] = jnp.maximum(out, 0.0).reshape(G, L, C).astype(o_ref.dtype)


def self_attention_block(x, p, *, group_batch=16, vmem_budget_bytes=8 << 20):
    """x: (B, L, C) attention groups; p: f32 weight dict for one SelfAttentionBlock."""
    x = x.astype(jnp.bfloat16)
    B, L, C = x.shape
    isa_c = p['wq1'].shape[1]
    scale = float(isa_c) ** -0.5

    # Groups per grid step: enough rows (G*L) to fill the MXU while keeping the
    # working set (bf16 in/out tiles + f32 sim/attn/v intermediates) inside a
    # VMEM budget that is safe on every generation (v7x has only 64 MiB VMEM).
    per_group = 4 * L * C * 4 + 3 * L * L * 4
    G = max(1, min(group_batch, B, vmem_budget_bytes // max(per_group, 1)))
    b_pad = _round_up(B, G)
    if b_pad != B:
        x = jnp.pad(x, ((0, b_pad - B), (0, 0), (0, 0)))

    bf = jnp.bfloat16
    # Pack the three x-projections (q1 | k1 | v) into one weight / bias.
    wqkv = jnp.concatenate([p['wq1'], p['wk1'], p['wv']], axis=1).astype(bf)
    bqkv = jnp.concatenate([p['bq1'], p['bk1'], p['bv']], axis=1)
    weights = [wqkv, bqkv, p['wq2'].astype(bf), p['bq2'],
               p['wk2'].astype(bf), p['bk2'], p['wo'].astype(bf), p['bo']]
    wspecs = [pl.BlockSpec(wt.shape, lambda i: (0, 0)) for wt in weights]

    out = pl.pallas_call(
        functools.partial(_attn_kernel, isa_c=isa_c, scale=scale),
        out_shape=jax.ShapeDtypeStruct((b_pad, L, C), jnp.bfloat16),
        grid=(b_pad // G,),
        in_specs=[pl.BlockSpec((G, L, C), lambda i: (i, 0, 0))] + wspecs,
        out_specs=pl.BlockSpec((G, L, C), lambda i: (i, 0, 0)),
        compiler_params=pltpu.CompilerParams(dimension_semantics=("parallel",)),
    )(x, *weights)
    return out[:B] if b_pad != B else out


# ---------------------------------------------------------------------------
# ISALayer forward (glue: transposes / reshapes / padding)
# ---------------------------------------------------------------------------

def isa_layer_forward(x_nchw, params, down_factor=(4, 4),
                      attn_fn=self_attention_block, conv_fn=conv1x1_relu):
    n, cin, h, w = x_nchw.shape
    c = params['w_in'].shape[1]

    # NCHW -> NHWC, bf16 activations end-to-end.
    x = jnp.transpose(x_nchw, (0, 2, 3, 1)).astype(jnp.bfloat16)

    # in_conv: 1x1 conv + ReLU (row-tiled pixel matmul)
    x = conv_fn(x.reshape(n * h * w, cin),
                params['w_in'], params['b_in']).reshape(n, h, w, c)

    loc_h, loc_w = down_factor
    glb_h, glb_w = math.ceil(h / loc_h), math.ceil(w / loc_w)
    pad_h, pad_w = glb_h * loc_h - h, glb_w * loc_w - w
    if pad_h > 0 or pad_w > 0:
        x = jnp.pad(x, ((0, 0),
                        (pad_h // 2, pad_h - pad_h // 2),
                        (pad_w // 2, pad_w - pad_w // 2),
                        (0, 0)))

    # global relation: sequence over (glb_h, glb_w), groups over (n, loc_h, loc_w)
    x = x.reshape(n, glb_h, loc_h, glb_w, loc_w, c)
    x = jnp.transpose(x, (0, 2, 4, 1, 3, 5)).reshape(n * loc_h * loc_w,
                                                     glb_h * glb_w, c)
    x = attn_fn(x, params['glb'])

    # local relation: sequence over (loc_h, loc_w), groups over (n, glb_h, glb_w)
    x = x.reshape(n, loc_h, loc_w, glb_h, glb_w, c)
    x = jnp.transpose(x, (0, 3, 4, 1, 2, 5)).reshape(n * glb_h * glb_w,
                                                     loc_h * loc_w, c)
    x = attn_fn(x, params['loc'])

    # back to NHWC, crop padding, return NCHW f32 (torch convention)
    x = x.reshape(n, glb_h, glb_w, loc_h, loc_w, c)
    x = jnp.transpose(x, (0, 1, 3, 2, 4, 5)).reshape(n, glb_h * loc_h,
                                                     glb_w * loc_w, c)
    if pad_h > 0 or pad_w > 0:
        x = x[:, pad_h // 2: pad_h // 2 + h, pad_w // 2: pad_w // 2 + w, :]
    return jnp.transpose(x, (0, 3, 1, 2)).astype(jnp.float32)


# ---------------------------------------------------------------------------
# Deterministic parameter init (shapes from ISALayer.__init__ with 1x1 convs)
# ---------------------------------------------------------------------------

def init_params(key, in_channels, channels, isa_channels):
    keys = iter(jax.random.split(key, 64))

    def w(shape):
        return jax.random.normal(next(keys), shape, jnp.float32) * 0.2

    def b(nc):
        return jax.random.normal(next(keys), (1, nc), jnp.float32) * 0.05

    def attn_params():
        return dict(
            wq1=w((channels, isa_channels)), bq1=b(isa_channels),
            wq2=w((isa_channels, isa_channels)), bq2=b(isa_channels),
            wk1=w((channels, isa_channels)), bk1=b(isa_channels),
            wk2=w((isa_channels, isa_channels)), bk2=b(isa_channels),
            wv=w((channels, channels)), bv=b(channels),
            wo=w((channels, channels)), bo=b(channels),
        )

    return dict(w_in=w((in_channels, channels)), b_in=b(channels),
                glb=attn_params(), loc=attn_params())


# ---------------------------------------------------------------------------
# Pure-JAX reference (same glue & bf16 cast points, no Pallas)
# ---------------------------------------------------------------------------

def _bf16_mm(a, bb):
    return jnp.dot(a.astype(jnp.bfloat16), bb.astype(jnp.bfloat16),
                   preferred_element_type=jnp.float32)


def _conv_ref(x2d, w, b):
    return jax.nn.relu(_bf16_mm(x2d, w) + b).astype(jnp.bfloat16)


def _attn_ref(x, p):
    isa_c = p['wq1'].shape[1]
    q = jax.nn.relu(_bf16_mm(x, p['wq1']) + p['bq1'])
    q = jax.nn.relu(_bf16_mm(q, p['wq2']) + p['bq2'])
    k = jax.nn.relu(_bf16_mm(x, p['wk1']) + p['bk1'])
    k = jax.nn.relu(_bf16_mm(k, p['wk2']) + p['bk2'])
    v = _bf16_mm(x, p['wv']) + p['bv']
    sim = jnp.einsum('blc,bmc->blm', q.astype(jnp.bfloat16), k.astype(jnp.bfloat16),
                     preferred_element_type=jnp.float32) * (float(isa_c) ** -0.5)
    attn = jax.nn.softmax(sim, axis=-1).astype(jnp.bfloat16)
    ctx = jnp.einsum('blm,bmc->blc', attn, v.astype(jnp.bfloat16),
                     preferred_element_type=jnp.float32)
    return jax.nn.relu(_bf16_mm(ctx, p['wo']) + p['bo']).astype(jnp.bfloat16)


# ---------------------------------------------------------------------------

if __name__ == "__main__":
    key = jax.random.PRNGKey(0)
    kx, kp = jax.random.split(key)

    # Small shapes: batch=2, in_channels=4, channels=8, isa_channels=4,
    # spatial 14x14 with down_factor=(4,4) -> global grid 4x4 (exercises padding).
    N, Cin, H, W = 2, 4, 14, 14
    channels, isa_channels = 8, 4
    down_factor = (4, 4)

    x = jax.random.normal(kx, (N, Cin, H, W), jnp.float32)
    params = init_params(kp, Cin, channels, isa_channels)

    out = jax.block_until_ready(isa_layer_forward(x, params, down_factor))
    ref = jax.block_until_ready(
        isa_layer_forward(x, params, down_factor,
                          attn_fn=_attn_ref, conv_fn=_conv_ref))

    assert out.shape == (N, channels, H, W), out.shape
    # bf16 matmuls + approx reciprocal: allow a few bf16 ulps of slack.
    assert jnp.allclose(out, ref, atol=2e-2, rtol=2e-2), \
        float(jnp.max(jnp.abs(out - ref)))
    print("KERNEL_OK")
</pallas_src>

<mosaic_0001>
module attributes {stable_mosaic.version = 11 : i64} {
  func.func @_mm_bias_relu_kernel(%arg0: i32, %arg1: memref<400x4xbf16, #tpu.memory_space<vmem>>, %arg2: memref<4x8xbf16, #tpu.memory_space<vmem>>, %arg3: memref<1x8xf32, #tpu.memory_space<vmem>>, %arg4: memref<400x8xbf16, #tpu.memory_space<vmem>>) attributes {dimension_semantics = [#tpu.dimension_semantics<parallel>], iteration_bounds = array<i64: 1>, scalar_prefetch = 0 : i64, scratch_operands = 0 : i64, tpu.core_type = #tpu.core_type<tc>, window_params = [{transform_indices = @transform_0, window_bounds = array<i64: 400, 4>}, {pipeline_mode = #tpu.pipeline_mode<synchronous>, transform_indices = @transform_1, window_bounds = array<i64: 4, 8>}, {pipeline_mode = #tpu.pipeline_mode<synchronous>, transform_indices = @transform_2, window_bounds = array<i64: 1, 8>}, {transform_indices = @transform_3, window_bounds = array<i64: 400, 8>}]} {
    %c0 = arith.constant 0 : index
    %c0_0 = arith.constant 0 : index
    %0 = vector.load %arg1[%c0, %c0_0] : memref<400x4xbf16, #tpu.memory_space<vmem>>, vector<400x4xbf16>
    %c0_1 = arith.constant 0 : index
    %c0_2 = arith.constant 0 : index
    %1 = vector.load %arg2[%c0_1, %c0_2] : memref<4x8xbf16, #tpu.memory_space<vmem>>, vector<4x8xbf16>
    %cst = arith.constant dense<0.000000e+00> : vector<400x8xf32>
    %2 = tpu.matmul %0, %1, %cst {dimension_numbers = #tpu.dot_dimension_numbers<[1], [0], [0], [1], [0, 0, 1, 1], [], []>} : vector<400x4xbf16>, vector<4x8xbf16>, vector<400x8xf32> -> vector<400x8xf32>
    %c0_3 = arith.constant 0 : index
    %c0_4 = arith.constant 0 : index
    %3 = vector.load %arg3[%c0_3, %c0_4] : memref<1x8xf32, #tpu.memory_space<vmem>>, vector<1x8xf32>
    %4 = vector.broadcast %3 : vector<1x8xf32> to vector<400x8xf32>
    %5 = arith.addf %2, %4 : vector<400x8xf32>
    %cst_5 = arith.constant 0.000000e+00 : f32
    %6 = vector.broadcast %cst_5 : f32 to vector<400x8xf32>
    %7 = arith.maximumf %5, %6 : vector<400x8xf32>
    %8 = arith.truncf %7 : vector<400x8xf32> to vector<400x8xbf16>
    %c0_6 = arith.constant 0 : index
    %c0_7 = arith.constant 0 : index
    %9 = vector.load %arg4[%c0_6, %c0_7] : memref<400x8xbf16, #tpu.memory_space<vmem>>, vector<400x8xbf16>
    tpu.vector_store %arg4[%c0_6, %c0_7], %8 {strides = array<i32>} : memref<400x8xbf16, #tpu.memory_space<vmem>>, vector<400x8xbf16>,
    return
  }
  func.func @transform_0(%arg0: i32) -> (i32, i32) {
    %c0_i32 = arith.constant 0 : i32
    %c0_i32_0 = arith.constant 0 : i32
    return %arg0, %c0_i32 : i32, i32
  }
  func.func @transform_1(%arg0: i32) -> (i32, i32) {
    %c0_i32 = arith.constant 0 : i32
    %c0_i32_0 = arith.constant 0 : i32
    %c0_i32_1 = arith.constant 0 : i32
    return %c0_i32, %c0_i32_0 : i32, i32
  }
  func.func @transform_2(%arg0: i32) -> (i32, i32) {
    %c0_i32 = arith.constant 0 : i32
    %c0_i32_0 = arith.constant 0 : i32
    %c0_i32_1 = arith.constant 0 : i32
    return %c0_i32, %c0_i32_0 : i32, i32
  }
  func.func @transform_3(%arg0: i32) -> (i32, i32) {
    %c0_i32 = arith.constant 0 : i32
    %c0_i32_0 = arith.constant 0 : i32
    return %arg0, %c0_i32 : i32, i32
  }
}

</mosaic_0001>

<bundles_post_ra>
// kernel: tpu_custom_call.1
= control target key start
LH: loop header
LB: loop body
LE: loop exit
PB: predicated region body
PF: predicated region fallthrough
CT: control target
= control target key end

     0   :  { %vm274_vm0 = vcmask 1041408   ;;  %v1124_v0 = vmov 0.0   ;;  %vm1125_vm1 = vmmov 0   ;;  %vm198_vm2 = vcmask 31744   ;;  %s1556_s1 = inlined_call_operand.vmem [shape: bf16[4,8], index: 1, kind: input, shape index: {}]   ;;  %s1557_s0 = inlined_call_operand.vmem [shape: bf16[400,4], index: 0, kind: input, shape index: {}]   ;;  %s1558_s2 = inlined_call_operand.vmem [shape: f32[1,8], index: 2, kind: input, shape index: {}]   ;;  %s1559_s3 = inlined_call_operand.vmem [shape: bf16[400,8], index: 3, kind: output, shape index: {}]  }
   0x1   :  { %993 = vmatprep.subr.bf16.mxu0 %v1124_v0  ;;  %v65_v1 = vld [vmem:[%s1556_s1] sm:$0x3]  ;;  %995 = vmatprep.mubr.msk.bf16.mxu0 %vm1125_vm1, %v1124_v0  ;;  %v1100_v4 = vld [vmem:[%s1557_s0 + $0x68] sm:$0xff]   ;;  %v1102_v6 = vld [vmem:[%s1557_s0 + $0x70] sm:$0xff]   ;;  %vm761_vm3 = vcmask 60416  }
   0x2   :  { %v276_v2 = vsel %vm274_vm0, %v65_v1, 0  ;;  %v1099_v3 = vld [vmem:[%s1557_s0] sm:$0xff]   ;;  %1095 = vmatprep.subr.bf16.mxu1 %v1124_v0  ;;  %1047 = vmatprep.mubr.msk.bf16.mxu1 %vm1125_vm1, %v1124_v0  ;;  %v1101_v5 = vld [vmem:[%s1557_s0 + $0x8] sm:$0xff]   ;;  %v1103_v7 = vld [vmem:[%s1557_s0 + $0x10] sm:$0xff]  }
   0x3   :  { %994 = vmatpush3.bf16.msra.mxu0 %v276_v2  ;;  %1096 = vmatpush3.bf16.msra.mxu1 %v276_v2  ;;  %v1104_v8 = vld [vmem:[%s1557_s0 + $0x78] sm:$0xff]   ;;  %v1106_v10 = vld [vmem:[%s1557_s0 + $0x80] sm:$0xff]   ;;  %v1108_v12 = vld [vmem:[%s1557_s0 + $0x88] sm:$0xff]  }
   0x4   :  { %v1105_v9 = vld [vmem:[%s1557_s0 + $0x18] sm:$0xff]   ;;  %v1107_v11 = vld [vmem:[%s1557_s0 + $0x20] sm:$0xff]   ;;  %v1109_v13 = vld [vmem:[%s1557_s0 + $0x28] sm:$0xff]  }
   0x5   :  { %v1110_v14 = vld [vmem:[%s1557_s0 + $0x90] sm:$0xff]   ;;  %v1112_v16 = vld [vmem:[%s1557_s0 + $0x98] sm:$0xff]   ;;  %v1114_v18 = vld [vmem:[%s1557_s0 + $0xa0] sm:$0xff]  }
   0x6   :  { %996 = vmatmul.mubr.msk.bf16.vlgmr.msra.gmra.mrb[0].mxu0 %vm198_vm2, %v1099_v3  ;;  %1048 = vmatmul.mubr.msk.bf16.vlgmr.msra.gmra.mrb[0].mxu1 %vm198_vm2, %v1100_v4  ;;  %v1111_v15 = vld [vmem:[%s1557_s0 + $0x30] sm:$0xff]   ;;  %v1113_v17 = vld [vmem:[%s1557_s0 + $0x38] sm:$0xff]   ;;  %v1115_v19 = vld [vmem:[%s1557_s0 + $0x40] sm:$0xff]  }
   0x7   :  { %999 = vmatprep.mubr.msk.bf16.mxu0 %vm1125_vm1, %v1124_v0  ;;  %1051 = vmatprep.mubr.msk.bf16.mxu1 %vm1125_vm1, %v1124_v0  ;;  %v1116_v20 = vld [vmem:[%s1557_s0 + $0xa8] sm:$0xff]   ;;  %v1118_v22 = vld [vmem:[%s1557_s0 + $0xb0] sm:$0xff]   ;;  %v1120_v24 = vld [vmem:[%s1557_s0 + $0xb8] sm:$0xff]  }
   0x8   :  { %v1117_v21 = vld [vmem:[%s1557_s0 + $0x48] sm:$0xff]   ;;  %v1119_v23 = vld [vmem:[%s1557_s0 + $0x50] sm:$0xff]   ;;  %v1121_v25 = vld [vmem:[%s1557_s0 + $0x58] sm:$0xff]  }
   0x9   :  { %v1122_v26 = vld [vmem:[%s1557_s0 + $0xc0] sm:$0xff]  }
   0xa   :  { %v1123_v27 = vld [vmem:[%s1557_s0 + $0x60] sm:$0xff]  }
   0xb   :  { %v1304_v28 = vld [vmem:[%s1558_s2] ss:$0 sm:$0xff] }
   0xe   :  { %1000 = vmatmul.mubr.msk.bf16.gmra.mrb[4].mxu0 %vm198_vm2, %v1101_v5  ;;  %1052 = vmatmul.mubr.msk.bf16.gmra.mrb[4].mxu1 %vm198_vm2, %v1102_v6 }
   0xf   :  { %1003 = vmatprep.mubr.msk.bf16.mxu0 %vm1125_vm1, %v1124_v0  ;;  %1055 = vmatprep.mubr.msk.bf16.mxu1 %vm1125_vm1, %v1124_v0 }
  0x16   :  { %1004 = vmatmul.mubr.msk.bf16.gmra.mrb[8].mxu0 %vm198_vm2, %v1103_v7  ;;  %1056 = vmatmul.mubr.msk.bf16.gmra.mrb[8].mxu1 %vm198_vm2, %v1104_v8 }
  0x17   :  { %1007 = vmatprep.mubr.msk.bf16.mxu0 %vm1125_vm1, %v1124_v0  ;;  %1059 = vmatprep.mubr.msk.bf16.mxu1 %vm1125_vm1, %v1124_v0 }
  0x1e   :  { %1008 = vmatmul.mubr.msk.bf16.gmra.mrb[12].mxu0 %vm198_vm2, %v1105_v9  ;;  %1060 = vmatmul.mubr.msk.bf16.gmra.mrb[12].mxu1 %vm198_vm2, %v1106_v10 }
  0x1f   :  { %1011 = vmatprep.mubr.msk.bf16.mxu0 %vm1125_vm1, %v1124_v0  ;;  %1063 = vmatprep.mubr.msk.bf16.mxu1 %vm1125_vm1, %v1124_v0 }
  0x26   :  { %1012 = vmatmul.mubr.msk.bf16.gmra.mrb[16].mxu0 %vm198_vm2, %v1107_v11  ;;  %1064 = vmatmul.mubr.msk.bf16.gmra.mrb[16].mxu1 %vm198_vm2, %v1108_v12 }
  0x27   :  { %1015 = vmatprep.mubr.msk.bf16.mxu0 %vm1125_vm1, %v1124_v0  ;;  %1067 = vmatprep.mubr.msk.bf16.mxu1 %vm1125_vm1, %v1124_v0 }
  0x2e   :  { %1016 = vmatmul.mubr.msk.bf16.gmra.mrb[20].mxu0 %vm198_vm2, %v1109_v13  ;;  %1068 = vmatmul.mubr.msk.bf16.gmra.mrb[20].mxu1 %vm198_vm2, %v1110_v14 }
  0x2f   :  { %1019 = vmatprep.mubr.msk.bf16.mxu0 %vm1125_vm1, %v1124_v0  ;;  %1071 = vmatprep.mubr.msk.bf16.mxu1 %vm1125_vm1, %v1124_v0 }
  0x36   :  { %1020 = vmatmul.mubr.msk.bf16.gmra.mrb[24].mxu0 %vm198_vm2, %v1111_v15  ;;  %1072 = vmatmul.mubr.msk.bf16.gmra.mrb[24].mxu1 %vm198_vm2, %v1112_v16 }
  0x37   :  { %1023 = vmatprep.mubr.msk.bf16.mxu0 %vm1125_vm1, %v1124_v0  ;;  %1075 = vmatprep.mubr.msk.bf16.mxu1 %vm1125_vm1, %v1124_v0 }
  0x3e   :  { %1024 = vmatmul.mubr.msk.bf16.gmra.mrb[28].mxu0 %vm198_vm2, %v1113_v17  ;;  %1076 = vmatmul.mubr.msk.bf16.gmra.mrb[28].mxu1 %vm198_vm2, %v1114_v18 }
  0x3f   :  { %1027 = vmatprep.mubr.msk.bf16.mxu0 %vm1125_vm1, %v1124_v0  ;;  %1079 = vmatprep.mubr.msk.bf16.mxu1 %vm1125_vm1, %v1124_v0 }
  0x46   :  { %1028 = vmatmul.mubr.msk.bf16.gmra.mrb[32].mxu0 %vm198_vm2, %v1115_v19  ;;  %1080 = vmatmul.mubr.msk.bf16.gmra.mrb[32].mxu1 %vm198_vm2, %v1116_v20 }
  0x47   :  { %1031 = vmatprep.mubr.msk.bf16.mxu0 %vm1125_vm1, %v1124_v0  ;;  %1083 = vmatprep.mubr.msk.bf16.mxu1 %vm1125_vm1, %v1124_v0 }
  0x4e   :  { %1032 = vmatmul.mubr.msk.bf16.gmra.mrb[36].mxu0 %vm198_vm2, %v1117_v21  ;;  %1084 = vmatmul.mubr.msk.bf16.gmra.mrb[36].mxu1 %vm198_vm2, %v1118_v22 }
  0x4f   :  { %1035 = vmatprep.mubr.msk.bf16.mxu0 %vm1125_vm1, %v1124_v0  ;;  %1087 = vmatprep.mubr.msk.bf16.mxu1 %vm1125_vm1, %v1124_v0 }
  0x56   :  { %1036 = vmatmul.mubr.msk.bf16.gmra.mrb[40].mxu0 %vm198_vm2, %v1119_v23  ;;  %1088 = vmatmul.mubr.msk.bf16.gmra.mrb[40].mxu1 %vm198_vm2, %v1120_v24 }
  0x57   :  { %1039 = vmatprep.mubr.msk.bf16.mxu0 %vm1125_vm1, %v1124_v0  ;;  %1091 = vmatprep.mubr.msk.bf16.mxu1 %vm1125_vm1, %v1124_v0 }
  0x5e   :  { %1040 = vmatmul.mubr.msk.bf16.gmra.mrb[44].mxu0 %vm198_vm2, %v1121_v25  ;;  %1092 = vmatmul.mubr.msk.bf16.gmra.mrb[44].mxu1 %vm198_vm2, %v1122_v26 }
  0x5f   :  { %1043 = vmatprep.mubr.msk.bf16.mxu0 %vm1125_vm1, %v1124_v0 }
  0x66   :  { %1044 = vmatmul.mubr.msk.bf16.gmra.mrb[48].mxu0 %vm198_vm2, %v1123_v27 }
  0xd9   :  { %v312_v29 = vpop.f32.mrb[0].mxu0  ;;  %v416_v30 = vpop.f32.mrb[0].mxu1 }
  0xda   :  { %v313_v31 = vadd.f32 %v1304_v28, %v312_v29  ;;  %v997_v32 = vpop.f32.mrb[1].mxu0  ;;  %v417_v33 = vadd.f32 %v1304_v28, %v416_v30  ;;  %v1049_v34 = vpop.f32.mrb[1].mxu1 }
  0xdb   :  { %v315_v35 = vpop.f32.mrb[2].mxu0  ;;  %v419_v36 = vpop.f32.mrb[2].mxu1 }
  0xdc   :  { %v511_v37 = vmax.f32 %v313_v31, 0.0  ;;  %v316_v38 = vadd.f32 %v1304_v28, %v315_v35  ;;  %v998_v39 = vpop.f32.mrb[3].mxu0  ;;  %v537_v40 = vmax.f32 %v417_v33, 0.0  ;;  %v420_v41 = vadd.f32 %v1304_v28, %v419_v36  ;;  %v1050_v42 = vpop.f32.mrb[3].mxu1 }
  0xde   :  { %v917_v43 = vpack.c.bf16 %v511_v37, %v511_v37  ;;  %v512_v44 = vmax.f32 %v316_v38, 0.0  ;;  %v943_v45 = vpack.c.bf16 %v537_v40, %v537_v40  ;;  %v538_v46 = vmax.f32 %v420_v41, 0.0 }
  0xe0   :  { %762 = vst.msk [vmem:[%s1559_s3] sm:$0xf] %vm761_vm3, %v917_v43  ;;  %v918_v47 = vpack.c.bf16 %v512_v44, %v512_v44  ;;  %788 = vst.msk [vmem:[%s1559_s3 + $0x68] sm:$0xf] %vm761_vm3, %v943_v45  ;;  %v944_v48 = vpack.c.bf16 %v538_v46, %v538_v46 }
  0xe1   :  { %v320_v49 = vpop.f32.mrb[4].mxu0  ;;  %v424_v50 = vpop.f32.mrb[4].mxu1 }
  0xe2   :  { %763 = vst.msk [vmem:[%s1559_s3 + $0x4] sm:$0xf] %vm761_vm3, %v918_v47  ;;  %789 = vst.msk [vmem:[%s1559_s3 + $0x6c] sm:$0xf] %vm761_vm3, %v944_v48  ;;  %v321_v51 = vadd.f32 %v1304_v28, %v320_v49  ;;  %v1001_v52 = vpop.f32.mrb[5].mxu0  ;;  %v425_v53 = vadd.f32 %v1304_v28, %v424_v50  ;;  %v1053_v54 = vpop.f32.mrb[5].mxu1 }
  0xe3   :  { %v323_v55 = vpop.f32.mrb[6].mxu0  ;;  %v427_v56 = vpop.f32.mrb[6].mxu1 }
  0xe4   :  { %v513_v57 = vmax.f32 %v321_v51, 0.0  ;;  %v324_v58 = vadd.f32 %v1304_v28, %v323_v55  ;;  %v1002_v59 = vpop.f32.mrb[7].mxu0  ;;  %v539_v60 = vmax.f32 %v425_v53, 0.0  ;;  %v428_v61 = vadd.f32 %v1304_v28, %v427_v56  ;;  %v1054_v62 = vpop.f32.mrb[7].mxu1 }
  0xe6   :  { %v919_v63 = vpack.c.bf16 %v513_v57, %v513_v57  ;;  %v514_v0 = vmax.f32 %v324_v58, 0.0  ;;  %v945_v1 = vpack.c.bf16 %v539_v60, %v539_v60  ;;  %v540_v2 = vmax.f32 %v428_v61, 0.0 }
  0xe8   :  { %764 = vst.msk [vmem:[%s1559_s3 + $0x8] sm:$0xf] %vm761_vm3, %v919_v63  ;;  %v920_v3 = vpack.c.bf16 %v514_v0, %v514_v0  ;;  %790 = vst.msk [vmem:[%s1559_s3 + $0x70] sm:$0xf] %vm761_vm3, %v945_v1  ;;  %v946_v4 = vpack.c.bf16 %v540_v2, %v540_v2 }
  0xe9   :  { %v328_v5 = vpop.f32.mrb[8].mxu0  ;;  %v432_v6 = vpop.f32.mrb[8].mxu1 }
  0xea   :  { %765 = vst.msk [vmem:[%s1559_s3 + $0xc] sm:$0xf] %vm761_vm3, %v920_v3  ;;  %791 = vst.msk [vmem:[%s1559_s3 + $0x74] sm:$0xf] %vm761_vm3, %v946_v4  ;;  %v329_v7 = vadd.f32 %v1304_v28, %v328_v5  ;;  %v1005_v8 = vpop.f32.mrb[9].mxu0  ;;  %v433_v9 = vadd.f32 %v1304_v28, %v432_v6  ;;  %v1057_v10 = vpop.f32.mrb[9].mxu1 }
  0xeb   :  { %v331_v11 = vpop.f32.mrb[10].mxu0  ;;  %v435_v12 = vpop.f32.mrb[10].mxu1 }
  0xec   :  { %v515_v13 = vmax.f32 %v329_v7, 0.0  ;;  %v332_v14 = vadd.f32 %v1304_v28, %v331_v11  ;;  %v1006_v15 = vpop.f32.mrb[11].mxu0  ;;  %v541_v16 = vmax.f32 %v433_v9, 0.0  ;;  %v436_v17 = vadd.f32 %v1304_v28, %v435_v12  ;;  %v1058_v18 = vpop.f32.mrb[11].mxu1 }
  0xee   :  { %v921_v19 = vpack.c.bf16 %v515_v13, %v515_v13  ;;  %v516_v20 = vmax.f32 %v332_v14, 0.0  ;;  %v947_v21 = vpack.c.bf16 %v541_v16, %v541_v16  ;;  %v542_v22 = vmax.f32 %v436_v17, 0.0 }
  0xf0   :  { %766 = vst.msk [vmem:[%s1559_s3 + $0x10] sm:$0xf] %vm761_vm3, %v921_v19  ;;  %v922_v23 = vpack.c.bf16 %v516_v20, %v516_v20  ;;  %792 = vst.msk [vmem:[%s1559_s3 + $0x78] sm:$0xf] %vm761_vm3, %v947_v21  ;;  %v948_v24 = vpack.c.bf16 %v542_v22, %v542_v22 }
  0xf1   :  { %v336_v25 = vpop.f32.mrb[12].mxu0  ;;  %v440_v26 = vpop.f32.mrb[12].mxu1 }
  0xf2   :  { %767 = vst.msk [vmem:[%s1559_s3 + $0x14] sm:$0xf] %vm761_vm3, %v922_v23  ;;  %793 = vst.msk [vmem:[%s1559_s3 + $0x7c] sm:$0xf] %vm761_vm3, %v948_v24  ;;  %v337_v27 = vadd.f32 %v1304_v28, %v336_v25  ;;  %v1009_v29 = vpop.f32.mrb[13].mxu0  ;;  %v441_v30 = vadd.f32 %v1304_v28, %v440_v26  ;;  %v1061_v31 = vpop.f32.mrb[13].mxu1 }
  0xf3   :  { %v339_v32 = vpop.f32.mrb[14].mxu0  ;;  %v443_v33 = vpop.f32.mrb[14].mxu1 }
  0xf4   :  { %v517_v34 = vmax.f32 %v337_v27, 0.0  ;;  %v340_v35 = vadd.f32 %v1304_v28, %v339_v32  ;;  %v1010_v36 = vpop.f32.mrb[15].mxu0  ;;  %v543_v37 = vmax.f32 %v441_v30, 0.0  ;;  %v444_v38 = vadd.f32 %v1304_v28, %v443_v33  ;;  %v1062_v39 = vpop.f32.mrb[15].mxu1 }
  0xf6   :  { %v923_v40 = vpack.c.bf16 %v517_v34, %v517_v34  ;;  %v518_v41 = vmax.f32 %v340_v35, 0.0  ;;  %v949_v42 = vpack.c.bf16 %v543_v37, %v543_v37  ;;  %v544_v43 = vmax.f32 %v444_v38, 0.0 }
  0xf8   :  { %768 = vst.msk [vmem:[%s1559_s3 + $0x18] sm:$0xf] %vm761_vm3, %v923_v40  ;;  %v924_v44 = vpack.c.bf16 %v518_v41, %v518_v41  ;;  %794 = vst.msk [vmem:[%s1559_s3 + $0x80] sm:$0xf] %vm761_vm3, %v949_v42  ;;  %v950_v45 = vpack.c.bf16 %v544_v43, %v544_v43 }
  0xf9   :  { %v344_v46 = vpop.f32.mrb[16].mxu0  ;;  %v448_v47 = vpop.f32.mrb[16].mxu1 }
  0xfa   :  { %769 = vst.msk [vmem:[%s1559_s3 + $0x1c] sm:$0xf] %vm761_vm3, %v924_v44  ;;  %795 = vst.msk [vmem:[%s1559_s3 + $0x84] sm:$0xf] %vm761_vm3, %v950_v45  ;;  %v345_v48 = vadd.f32 %v1304_v28, %v344_v46  ;;  %v1013_v49 = vpop.f32.mrb[17].mxu0  ;;  %v449_v50 = vadd.f32 %v1304_v28, %v448_v47  ;;  %v1065_v51 = vpop.f32.mrb[17].mxu1 }
  0xfb   :  { %v347_v52 = vpop.f32.mrb[18].mxu0  ;;  %v451_v53 = vpop.f32.mrb[18].mxu1 }
  0xfc   :  { %v519_v54 = vmax.f32 %v345_v48, 0.0  ;;  %v348_v55 = vadd.f32 %v1304_v28, %v347_v52  ;;  %v1014_v56 = vpop.f32.mrb[19].mxu0  ;;  %v545_v57 = vmax.f32 %v449_v50, 0.0  ;;  %v452_v58 = vadd.f32 %v1304_v28, %v451_v53  ;;  %v1066_v59 = vpop.f32.mrb[19].mxu1 }
  0xfe   :  { %v925_v60 = vpack.c.bf16 %v519_v54, %v519_v54  ;;  %v520_v61 = vmax.f32 %v348_v55, 0.0  ;;  %v951_v62 = vpack.c.bf16 %v545_v57, %v545_v57  ;;  %v546_v63 = vmax.f32 %v452_v58, 0.0 }
 0x100   :  { %770 = vst.msk [vmem:[%s1559_s3 + $0x20] sm:$0xf] %vm761_vm3, %v925_v60  ;;  %v926_v0 = vpack.c.bf16 %v520_v61, %v520_v61  ;;  %796 = vst.msk [vmem:[%s1559_s3 + $0x88] sm:$0xf] %vm761_vm3, %v951_v62  ;;  %v952_v1 = vpack.c.bf16 %v546_v63, %v546_v63 }
 0x101   :  { %v352_v2 = vpop.f32.mrb[20].mxu0  ;;  %v456_v3 = vpop.f32.mrb[20].mxu1 }
 0x102   :  { %771 = vst.msk [vmem:[%s1559_s3 + $0x24] sm:$0xf] %vm761_vm3, %v926_v0  ;;  %797 = vst.msk [vmem:[%s1559_s3 + $0x8c] sm:$0xf] %vm761_vm3, %v952_v1  ;;  %v353_v4 = vadd.f32 %v1304_v28, %v352_v2  ;;  %v1017_v5 = vpop.f32.mrb[21].mxu0  ;;  %v457_v6 = vadd.f32 %v1304_v28, %v456_v3  ;;  %v1069_v7 = vpop.f32.mrb[21].mxu1 }
 0x103   :  { %v355_v8 = vpop.f32.mrb[22].mxu0  ;;  %v459_v9 = vpop.f32.mrb[22].mxu1 }
 0x104   :  { %v521_v10 = vmax.f32 %v353_v4, 0.0  ;;  %v356_v11 = vadd.f32 %v1304_v28, %v355_v8  ;;  %v1018_v12 = vpop.f32.mrb[23].mxu0  ;;  %v547_v13 = vmax.f32 %v457_v6, 0.0  ;;  %v460_v14 = vadd.f32 %v1304_v28, %v459_v9  ;;  %v1070_v15 = vpop.f32.mrb[23].mxu1 }
 0x106   :  { %v927_v16 = vpack.c.bf16 %v521_v10, %v521_v10  ;;  %v522_v17 = vmax.f32 %v356_v11, 0.0  ;;  %v953_v18 = vpack.c.bf16 %v547_v13, %v547_v13  ;;  %v548_v19 = vmax.f32 %v460_v14, 0.0 }
 0x108   :  { %772 = vst.msk [vmem:[%s1559_s3 + $0x28] sm:$0xf] %vm761_vm3, %v927_v16  ;;  %v928_v20 = vpack.c.bf16 %v522_v17, %v522_v17  ;;  %798 = vst.msk [vmem:[%s1559_s3 + $0x90] sm:$0xf] %vm761_vm3, %v953_v18  ;;  %v954_v21 = vpack.c.bf16 %v548_v19, %v548_v19 }
 0x109   :  { %v360_v22 = vpop.f32.mrb[24].mxu0  ;;  %v464_v23 = vpop.f32.mrb[24].mxu1 }
 0x10a   :  { %773 = vst.msk [vmem:[%s1559_s3 + $0x2c] sm:$0xf] %vm761_vm3, %v928_v20  ;;  %799 = vst.msk [vmem:[%s1559_s3 + $0x94] sm:$0xf] %vm761_vm3, %v954_v21  ;;  %v361_v24 = vadd.f32 %v1304_v28, %v360_v22  ;;  %v1021_v25 = vpop.f32.mrb[25].mxu0  ;;  %v465_v26 = vadd.f32 %v1304_v28, %v464_v23  ;;  %v1073_v27 = vpop.f32.mrb[25].mxu1 }
 0x10b   :  { %v363_v29 = vpop.f32.mrb[26].mxu0  ;;  %v467_v30 = vpop.f32.mrb[26].mxu1 }
 0x10c   :  { %v523_v31 = vmax.f32 %v361_v24, 0.0  ;;  %v364_v32 = vadd.f32 %v1304_v28, %v363_v29  ;;  %v1022_v33 = vpop.f32.mrb[27].mxu0  ;;  %v549_v34 = vmax.f32 %v465_v26, 0.0  ;;  %v468_v35 = vadd.f32 %v1304_v28, %v467_v30  ;;  %v1074_v36 = vpop.f32.mrb[27].mxu1 }
 0x10e   :  { %v929_v37 = vpack.c.bf16 %v523_v31, %v523_v31  ;;  %v524_v38 = vmax.f32 %v364_v32, 0.0  ;;  %v955_v39 = vpack.c.bf16 %v549_v34, %v549_v34  ;;  %v550_v40 = vmax.f32 %v468_v35, 0.0 }
 0x110   :  { %774 = vst.msk [vmem:[%s1559_s3 + $0x30] sm:$0xf] %vm761_vm3, %v929_v37  ;;  %v930_v41 = vpack.c.bf16 %v524_v38, %v524_v38  ;;  %800 = vst.msk [vmem:[%s1559_s3 + $0x98] sm:$0xf] %vm761_vm3, %v955_v39  ;;  %v956_v42 = vpack.c.bf16 %v550_v40, %v550_v40 }
 0x111   :  { %v368_v43 = vpop.f32.mrb[28].mxu0  ;;  %v472_v44 = vpop.f32.mrb[28].mxu1 }
 0x112   :  { %775 = vst.msk [vmem:[%s1559_s3 + $0x34] sm:$0xf] %vm761_vm3, %v930_v41  ;;  %801 = vst.msk [vmem:[%s1559_s3 + $0x9c] sm:$0xf] %vm761_vm3, %v956_v42  ;;  %v369_v45 = vadd.f32 %v1304_v28, %v368_v43  ;;  %v1025_v46 = vpop.f32.mrb[29].mxu0  ;;  %v473_v47 = vadd.f32 %v1304_v28, %v472_v44  ;;  %v1077_v48 = vpop.f32.mrb[29].mxu1 }
 0x113   :  { %v371_v49 = vpop.f32.mrb[30].mxu0  ;;  %v475_v50 = vpop.f32.mrb[30].mxu1 }
 0x114   :  { %v525_v51 = vmax.f32 %v369_v45, 0.0  ;;  %v372_v52 = vadd.f32 %v1304_v28, %v371_v49  ;;  %v1026_v53 = vpop.f32.mrb[31].mxu0  ;;  %v551_v54 = vmax.f32 %v473_v47, 0.0  ;;  %v476_v55 = vadd.f32 %v1304_v28, %v475_v50  ;;  %v1078_v56 = vpop.f32.mrb[31].mxu1 }
 0x116   :  { %v931_v57 = vpack.c.bf16 %v525_v51, %v525_v51  ;;  %v526_v58 = vmax.f32 %v372_v52, 0.0  ;;  %v957_v59 = vpack.c.bf16 %v551_v54, %v551_v54  ;;  %v552_v60 = vmax.f32 %v476_v55, 0.0 }
 0x118   :  { %776 = vst.msk [vmem:[%s1559_s3 + $0x38] sm:$0xf] %vm761_vm3, %v931_v57  ;;  %v932_v61 = vpack.c.bf16 %v526_v58, %v526_v58  ;;  %802 = vst.msk [vmem:[%s1559_s3 + $0xa0] sm:$0xf] %vm761_vm3, %v957_v59  ;;  %v958_v62 = vpack.c.bf16 %v552_v60, %v552_v60 }
 0x119   :  { %v376_v63 = vpop.f32.mrb[32].mxu0  ;;  %v480_v0 = vpop.f32.mrb[32].mxu1 }
 0x11a   :  { %777 = vst.msk [vmem:[%s1559_s3 + $0x3c] sm:$0xf] %vm761_vm3, %v932_v61  ;;  %803 = vst.msk [vmem:[%s1559_s3 + $0xa4] sm:$0xf] %vm761_vm3, %v958_v62  ;;  %v377_v1 = vadd.f32 %v1304_v28, %v376_v63  ;;  %v1029_v2 = vpop.f32.mrb[33].mxu0  ;;  %v481_v3 = vadd.f32 %v1304_v28, %v480_v0  ;;  %v1081_v4 = vpop.f32.mrb[33].mxu1 }
 0x11b   :  { %v379_v5 = vpop.f32.mrb[34].mxu0  ;;  %v483_v6 = vpop.f32.mrb[34].mxu1 }
 0x11c   :  { %v527_v7 = vmax.f32 %v377_v1, 0.0  ;;  %v380_v8 = vadd.f32 %v1304_v28, %v379_v5  ;;  %v1030_v9 = vpop.f32.mrb[35].mxu0  ;;  %v553_v10 = vmax.f32 %v481_v3, 0.0  ;;  %v484_v11 = vadd.f32 %v1304_v28, %v483_v6  ;;  %v1082_v12 = vpop.f32.mrb[35].mxu1 }
 0x11e   :  { %v933_v13 = vpack.c.bf16 %v527_v7, %v527_v7  ;;  %v528_v14 = vmax.f32 %v380_v8, 0.0  ;;  %v959_v15 = vpack.c.bf16 %v553_v10, %v553_v10  ;;  %v554_v16 = vmax.f32 %v484_v11, 0.0 }
 0x120   :  { %778 = vst.msk [vmem:[%s1559_s3 + $0x40] sm:$0xf] %vm761_vm3, %v933_v13  ;;  %v934_v17 = vpack.c.bf16 %v528_v14, %v528_v14  ;;  %804 = vst.msk [vmem:[%s1559_s3 + $0xa8] sm:$0xf] %vm761_vm3, %v959_v15  ;;  %v960_v18 = vpack.c.bf16 %v554_v16, %v554_v16 }
 0x121   :  { %v384_v19 = vpop.f32.mrb[36].mxu0  ;;  %v488_v20 = vpop.f32.mrb[36].mxu1 }
 0x122   :  { %779 = vst.msk [vmem:[%s1559_s3 + $0x44] sm:$0xf] %vm761_vm3, %v934_v17  ;;  %805 = vst.msk [vmem:[%s1559_s3 + $0xac] sm:$0xf] %vm761_vm3, %v960_v18  ;;  %v385_v21 = vadd.f32 %v1304_v28, %v384_v19  ;;  %v1033_v22 = vpop.f32.mrb[37].mxu0  ;;  %v489_v23 = vadd.f32 %v1304_v28, %v488_v20  ;;  %v1085_v24 = vpop.f32.mrb[37].mxu1 }
 0x123   :  { %v387_v25 = vpop.f32.mrb[38].mxu0  ;;  %v491_v26 = vpop.f32.mrb[38].mxu1 }
 0x124   :  { %v529_v27 = vmax.f32 %v385_v21, 0.0  ;;  %v388_v29 = vadd.f32 %v1304_v28, %v387_v25  ;;  %v1034_v30 = vpop.f32.mrb[39].mxu0  ;;  %v555_v31 = vmax.f32 %v489_v23, 0.0  ;;  %v492_v32 = vadd.f32 %v1304_v28, %v491_v26  ;;  %v1086_v33 = vpop.f32.mrb[39].mxu1 }
 0x126   :  { %v935_v34 = vpack.c.bf16 %v529_v27, %v529_v27  ;;  %v530_v35 = vmax.f32 %v388_v29, 0.0  ;;  %v961_v36 = vpack.c.bf16 %v555_v31, %v555_v31  ;;  %v556_v37 = vmax.f32 %v492_v32, 0.0 }
 0x128   :  { %780 = vst.msk [vmem:[%s1559_s3 + $0x48] sm:$0xf] %vm761_vm3, %v935_v34  ;;  %v936_v38 = vpack.c.bf16 %v530_v35, %v530_v35  ;;  %806 = vst.msk [vmem:[%s1559_s3 + $0xb0] sm:$0xf] %vm761_vm3, %v961_v36  ;;  %v962_v39 = vpack.c.bf16 %v556_v37, %v556_v37 }
 0x129   :  { %v392_v40 = vpop.f32.mrb[40].mxu0  ;;  %v496_v41 = vpop.f32.mrb[40].mxu1 }
 0x12a   :  { %781 = vst.msk [vmem:[%s1559_s3 + $0x4c] sm:$0xf] %vm761_vm3, %v936_v38  ;;  %807 = vst.msk [vmem:[%s1559_s3 + $0xb4] sm:$0xf] %vm761_vm3, %v962_v39  ;;  %v393_v42 = vadd.f32 %v1304_v28, %v392_v40  ;;  %v1037_v43 = vpop.f32.mrb[41].mxu0  ;;  %v497_v44 = vadd.f32 %v1304_v28, %v496_v41  ;;  %v1089_v45 = vpop.f32.mrb[41].mxu1 }
 0x12b   :  { %v395_v46 = vpop.f32.mrb[42].mxu0  ;;  %v499_v47 = vpop.f32.mrb[42].mxu1 }
 0x12c   :  { %v531_v48 = vmax.f32 %v393_v42, 0.0  ;;  %v396_v49 = vadd.f32 %v1304_v28, %v395_v46  ;;  %v1038_v50 = vpop.f32.mrb[43].mxu0  ;;  %v557_v51 = vmax.f32 %v497_v44, 0.0  ;;  %v500_v52 = vadd.f32 %v1304_v28, %v499_v47  ;;  %v1090_v53 = vpop.f32.mrb[43].mxu1 }
 0x12e   :  { %v937_v54 = vpack.c.bf16 %v531_v48, %v531_v48  ;;  %v532_v55 = vmax.f32 %v396_v49, 0.0  ;;  %v963_v56 = vpack.c.bf16 %v557_v51, %v557_v51  ;;  %v558_v57 = vmax.f32 %v500_v52, 0.0 }
 0x130   :  { %782 = vst.msk [vmem:[%s1559_s3 + $0x50] sm:$0xf] %vm761_vm3, %v937_v54  ;;  %v938_v58 = vpack.c.bf16 %v532_v55, %v532_v55  ;;  %808 = vst.msk [vmem:[%s1559_s3 + $0xb8] sm:$0xf] %vm761_vm3, %v963_v56  ;;  %v964_v59 = vpack.c.bf16 %v558_v57, %v558_v57 }
 0x131   :  { %v400_v60 = vpop.f32.mrb[44].mxu0  ;;  %v504_v61 = vpop.f32.mrb[44].mxu1 }
 0x132   :  { %783 = vst.msk [vmem:[%s1559_s3 + $0x54] sm:$0xf] %vm761_vm3, %v938_v58  ;;  %809 = vst.msk [vmem:[%s1559_s3 + $0xbc] sm:$0xf] %vm761_vm3, %v964_v59  ;;  %v401_v62 = vadd.f32 %v1304_v28, %v400_v60  ;;  %v1041_v63 = vpop.f32.mrb[45].mxu0  ;;  %v505_v0 = vadd.f32 %v1304_v28, %v504_v61  ;;  %v1093_v1 = vpop.f32.mrb[45].mxu1 }
 0x133   :  { %v403_v2 = vpop.f32.mrb[46].mxu0  ;;  %v507_v3 = vpop.f32.mrb[46].mxu1 }
 0x134   :  { %v533_v4 = vmax.f32 %v401_v62, 0.0  ;;  %v404_v5 = vadd.f32 %v1304_v28, %v403_v2  ;;  %v1042_v6 = vpop.f32.mrb[47].mxu0  ;;  %v559_v7 = vmax.f32 %v505_v0, 0.0  ;;  %v508_v8 = vadd.f32 %v1304_v28, %v507_v3  ;;  %v1094_v9 = vpop.f32.mrb[47].mxu1 }
 0x136   :  { %v939_v10 = vpack.c.bf16 %v533_v4, %v533_v4  ;;  %v534_v11 = vmax.f32 %v404_v5, 0.0  ;;  %v965_v12 = vpack.c.bf16 %v559_v7, %v559_v7  ;;  %v560_v13 = vmax.f32 %v508_v8, 0.0 }
 0x138   :  { %784 = vst.msk [vmem:[%s1559_s3 + $0x58] sm:$0xf] %vm761_vm3, %v939_v10  ;;  %v940_v14 = vpack.c.bf16 %v534_v11, %v534_v11  ;;  %810 = vst.msk [vmem:[%s1559_s3 + $0xc0] sm:$0xf] %vm761_vm3, %v965_v12  ;;  %v966_v15 = vpack.c.bf16 %v560_v13, %v560_v13 }
 0x139   :  { %v408_v16 = vpop.f32.mrb[48].mxu0 }
 0x13a   :  { %785 = vst.msk [vmem:[%s1559_s3 + $0x5c] sm:$0xf] %vm761_vm3, %v940_v14  ;;  %811 = vst.msk [vmem:[%s1559_s3 + $0xc4] sm:$0xf] %vm761_vm3, %v966_v15  ;;  %v409_v17 = vadd.f32 %v1304_v28, %v408_v16  ;;  %v1045_v18 = vpop.f32.mrb[49].mxu0 }
 0x13b   :  { %v411_v19 = vpop.f32.mrb[50].mxu0 }
 0x13c   :  { %v535_v20 = vmax.f32 %v409_v17, 0.0  ;;  %v412_v21 = vadd.f32 %v1304_v28, %v411_v19  ;;  %v1046_v22 = vpop.f32.mrb[51].mxu0 }
 0x13e   :  { %v941_v23 = vpack.c.bf16 %v535_v20, %v535_v20  ;;  %v536_v24 = vmax.f32 %v412_v21, 0.0 }
 0x140   :  { %786 = vst.msk [vmem:[%s1559_s3 + $0x60] sm:$0xf] %vm761_vm3, %v941_v23  ;;  %v942_v25 = vpack.c.bf16 %v536_v24, %v536_v24 }
 0x142   :  { %787 = vst.msk [vmem:[%s1559_s3 + $0x64] sm:$0xf] %vm761_vm3, %v942_v25 }

</bundles_post_ra>
